<compile_context>
chip_gen: v7x
topology: tpu7x:2x2x1
jax: 0.10.0
libtpu: 0.0.40
codegen_flags: <defaults>
</compile_context>

<pallas_src>
from typing import NamedTuple

import jax
import jax.numpy as jnp
from jax.experimental import pallas as pl
from jax.experimental.pallas import tpu as pltpu


def _round_up(n, m):
    return ((n + m - 1) // m) * m


# ----------------------------------------------------------------------------------
# Kernels
# ----------------------------------------------------------------------------------
def _make_mlp_kernel(layer_dims, stream_weights):
    """layer_dims: tuple of (in_pad, out_pad) per layer (static Python ints)."""
    n_layers = len(layer_dims)

    def resident_kernel(*refs):
        # refs = (x, w0, b0, ..., w_{L-1}, b_{L-1}, o)
        x_ref = refs[0]
        o_ref = refs[1 + 2 * n_layers]
        h = x_ref[...]                                            # bf16 activations
        for i in range(n_layers):
            w_ref = refs[1 + 2 * i]
            b_ref = refs[2 + 2 * i]
            acc = jnp.dot(h, w_ref[...],                          # bf16 x bf16 -> f32 MXU
                          preferred_element_type=jnp.float32)
            acc = jnp.maximum(acc + b_ref[...], 0.0)              # bias (f32) + ReLU
            h = acc.astype(jnp.bfloat16) if i < n_layers - 1 else acc
        o_ref[...] = h.astype(o_ref.dtype)

    def streaming_kernel(*refs):
        # refs = (x, w0_hbm, b0, ..., w_{L-1}_hbm, b_{L-1}, o, wbuf, sem)
        x_ref = refs[0]
        o_ref = refs[1 + 2 * n_layers]
        wbuf = refs[2 + 2 * n_layers]          # VMEM (2, max_in_pad, max_out_pad) bf16
        sem = refs[3 + 2 * n_layers]           # DMA semaphores (2,)

        def w_copy(layer, slot):
            in_p, out_p = layer_dims[layer]
            return pltpu.make_async_copy(
                refs[1 + 2 * layer],                       # HBM weight ref (pl.ANY)
                wbuf.at[slot, :in_p, :out_p],
                sem.at[slot])

        w_copy(0, 0).start()                   # prime: fetch layer 0
        h = x_ref[...]
        for i in range(n_layers):
            slot = i % 2
            in_p, out_p = layer_dims[i]
            w_copy(i, slot).wait()
            if i + 1 < n_layers:               # prefetch next layer into the other slot
                w_copy(i + 1, 1 - slot).start()
            b_ref = refs[2 + 2 * i]
            acc = jnp.dot(h, wbuf[slot, :in_p, :out_p],
                          preferred_element_type=jnp.float32)
            acc = jnp.maximum(acc + b_ref[...], 0.0)
            h = acc.astype(jnp.bfloat16) if i < n_layers - 1 else acc
        o_ref[...] = h.astype(o_ref.dtype)

    return streaming_kernel if stream_weights else resident_kernel


# ----------------------------------------------------------------------------------
# One-time parameter preparation (hoisted out of the forward, per review)
# ----------------------------------------------------------------------------------
class PreparedMLP(NamedTuple):
    layers: tuple        # tuple of (W_padded bf16 (in_pad,out_pad), b_padded f32 (1,out_pad))
    layer_dims: tuple    # tuple of (in_pad, out_pad)
    in_dim: int
    out_dim: int


def prepare_params(params):
    """Pad every feature dim to a multiple of 128 and cast W to bf16 / b to f32.

    params: list of (W, b) with W: (in_dim, out_dim), b: (1, out_dim) or (out_dim,).
    Call once at init; reuse the result across forward calls.
    """
    in_dim = int(params[0][0].shape[0])
    out_dim = int(params[-1][0].shape[1])
    in_pad = _round_up(in_dim, 128)
    layers, layer_dims = [], []
    for (w, b) in params:
        i_d, o_d = int(w.shape[0]), int(w.shape[1])
        o_pad = _round_up(o_d, 128)
        w_p = jnp.zeros((in_pad, o_pad), jnp.bfloat16)
        w_p = w_p.at[:i_d, :o_d].set(w.astype(jnp.bfloat16))
        b_p = jnp.zeros((1, o_pad), jnp.float32)
        b_p = b_p.at[:, :o_d].set(jnp.asarray(b, jnp.float32).reshape(1, -1))
        layers.append((w_p, b_p))
        layer_dims.append((in_pad, o_pad))
        in_pad = o_pad
    return PreparedMLP(tuple(layers), tuple(layer_dims), in_dim, out_dim)


# ----------------------------------------------------------------------------------
# Forward
# ----------------------------------------------------------------------------------
def net_builder_forward(x, prepared, *, tm_max=256, out_dtype=jnp.float32,
                        force_stream_weights=None, unpad_output=True):
    """Fused forward of Net_Builder.

    x:        (batch, inner_shape) float32
    prepared: PreparedMLP from prepare_params()
    Returns:  (batch, net_structure[-1]) in out_dtype (f32 default).
    """
    layers = prepared.layers
    layer_dims = prepared.layer_dims
    n_layers = len(layers)
    M, K = x.shape
    assert K == prepared.in_dim, "input feature dim mismatch with prepared params"
    K_pad = layer_dims[0][0]
    final_out_pad = layer_dims[-1][1]

    # --- batch tile: multiple of 16; >= 2 grid steps when M >= 32 (v7x megacore);
    #     pad the batch to a multiple of tm (no degenerate divisor tiles).
    tm_max = max(16, (tm_max // 16) * 16)
    m16 = _round_up(max(M, 16), 16)
    if m16 >= 32:
        tm = min(tm_max, max(16, ((m16 // 2) // 16) * 16))
    else:
        tm = m16
    M_pad = _round_up(m16, tm)
    grid = (M_pad // tm,)

    x_p = x.astype(jnp.bfloat16)
    if (M_pad - M) or (K_pad - K):
        x_p = jnp.pad(x_p, ((0, M_pad - M), (0, K_pad - K)))

    # --- VMEM accounting & mode selection (generation-aware budget).
    out_itemsize = jnp.dtype(out_dtype).itemsize
    weight_bytes = sum(int(w.size) * w.dtype.itemsize for (w, _) in layers)
    bias_bytes = sum(int(b.size) * b.dtype.itemsize for (_, b) in layers)
    max_in_pad = max(d[0] for d in layer_dims)
    max_out_pad = max(d[1] for d in layer_dims)
    act_bytes = 2 * (tm * K_pad * 2 + bias_bytes + tm * final_out_pad * out_itemsize)
    interm_bytes = 2 * tm * max_out_pad * 4
    try:
        phys_vmem = int(pltpu.get_tpu_info().vmem_capacity_bytes)
    except Exception:
        phys_vmem = 64 << 20                  # conservative (v7x per-TC) fallback
    budget = max(32 << 20, phys_vmem - (16 << 20))   # leave headroom, never full VMEM

    resident_need = act_bytes + interm_bytes + 2 * weight_bytes  # pipeline double-buffers
    stream_weights = resident_need > budget
    if force_stream_weights is not None:
        stream_weights = bool(force_stream_weights)

    # --- BlockSpecs.
    in_specs = [pl.BlockSpec((tm, K_pad), lambda i: (i, 0))]
    flat_args = [x_p]
    for (w_p, b_p) in layers:
        if stream_weights:
            in_specs.append(pl.BlockSpec(memory_space=pl.ANY))    # weight stays in HBM
        else:
            in_specs.append(pl.BlockSpec(w_p.shape, lambda i: (0, 0)))
        in_specs.append(pl.BlockSpec(b_p.shape, lambda i: (0, 0)))
        flat_args.extend([w_p, b_p])

    if stream_weights:
        scratch_shapes = [pltpu.VMEM((2, max_in_pad, max_out_pad), jnp.bfloat16),
                          pltpu.SemaphoreType.DMA((2,))]
        need = act_bytes + interm_bytes + 2 * max_in_pad * max_out_pad * 2
    else:
        scratch_shapes = []
        need = resident_need
    vmem_limit = int(min(budget, max(need + (16 << 20), 32 << 20)))

    flops = 2 * M_pad * sum(ip * op for (ip, op) in layer_dims)
    bytes_accessed = (int(x_p.size) * 2 + weight_bytes + bias_bytes
                      + M_pad * final_out_pad * out_itemsize)
    cost = pl.CostEstimate(flops=int(flops), transcendentals=0,
                           bytes_accessed=int(bytes_accessed))

    out_padded = pl.pallas_call(
        _make_mlp_kernel(layer_dims, stream_weights),
        out_shape=jax.ShapeDtypeStruct((M_pad, final_out_pad), out_dtype),
        grid=grid,
        in_specs=in_specs,
        out_specs=pl.BlockSpec((tm, final_out_pad), lambda i: (i, 0)),
        scratch_shapes=scratch_shapes,
        compiler_params=pltpu.CompilerParams(
            dimension_semantics=("parallel",),
            vmem_limit_bytes=vmem_limit),
        cost_estimate=cost,
    )(*flat_args)

    if not unpad_output:
        return out_padded                      # (M_pad, final_out_pad), still lane-dense
    return out_padded[:M, :prepared.out_dim]


# ----------------------------------------------------------------------------------
# Init & references
# ----------------------------------------------------------------------------------
def init_params(key, inner_shape, net_structure):
    """nn.Linear-style U[-1/sqrt(fan_in), +1/sqrt(fan_in)] init; W stored (in, out)."""
    params = []
    in_dim = inner_shape
    for hidden in net_structure:
        key, kw, kb = jax.random.split(key, 3)
        bound = 1.0 / jnp.sqrt(jnp.float32(in_dim))
        w = jax.random.uniform(kw, (in_dim, hidden), jnp.float32, -bound, bound)
        b = jax.random.uniform(kb, (1, hidden), jnp.float32, -bound, bound)
        params.append((w, b))
        in_dim = hidden
    return params


def reference_forward_f32(x, params):
    h = x
    for (w, b) in params:
        h = jnp.maximum(h @ w + b, 0.0)
    return h


def reference_forward_bf16(x, params):
    """Reference with numerics matching the kernel (bf16 operands, f32 accumulate)."""
    n = len(params)
    h = x.astype(jnp.bfloat16)
    for i, (w, b) in enumerate(params):
        acc = jnp.dot(h, w.astype(jnp.bfloat16), preferred_element_type=jnp.float32)
        acc = jnp.maximum(acc + b, 0.0)
        h = acc.astype(jnp.bfloat16) if i < n - 1 else acc
    return h


# ----------------------------------------------------------------------------------
if __name__ == "__main__":
    # Small shapes consistent with the module. batch deliberately NOT a multiple of 16
    # to exercise batch padding; padded hidden dims differ (128 / 256 / 128) to
    # exercise the partial-slice weight-streaming path.
    inner_shape = 32
    net_structure = (64, 256, 32)   # out_shape is unused by Net_Builder.forward
    batch = 20

    key = jax.random.PRNGKey(0)
    key, kx = jax.random.split(key)
    x = jax.random.normal(kx, (batch, inner_shape), jnp.float32)
    params = init_params(key, inner_shape, net_structure)

    prepared = prepare_params(params)           # one-time pad / cast (hoisted per review)

    # Default path: weights are tiny -> fully VMEM-resident mode is auto-selected.
    out = jax.block_until_ready(net_builder_forward(x, prepared))
    assert out.shape == (batch, net_structure[-1])

    # Forced weight-streaming path (manual double-buffered DMA from HBM) — the mode a
    # large net_structure would take on v7x's 64 MiB VMEM. Exercised here for coverage.
    out_stream = jax.block_until_ready(
        net_builder_forward(x, prepared, force_stream_weights=True))
    assert out_stream.shape == out.shape

    ref_bf16 = reference_forward_bf16(x, params)
    ref_f32 = reference_forward_f32(x, params)

    # Tight check vs a reference using the same numerics (bf16 MXU operands, f32 acc).
    assert jnp.allclose(out, ref_bf16, atol=2e-3, rtol=2e-3), "resident vs bf16 ref"
    assert jnp.allclose(out_stream, ref_bf16, atol=2e-3, rtol=2e-3), "streaming vs bf16 ref"
    # Loose sanity check vs the pure-f32 reference (operands rounded to bf16).
    assert jnp.allclose(out, ref_f32, atol=5e-2, rtol=5e-2), "mismatch vs f32 reference"

    print("KERNEL_OK")
</pallas_src>

<mosaic_0001>
module attributes {stable_mosaic.version = 11 : i64} {
  func.func @resident_kernel(%arg0: i32, %arg1: memref<16x128xbf16, #tpu.memory_space<vmem>>, %arg2: memref<128x128xbf16, #tpu.memory_space<vmem>>, %arg3: memref<1x128xf32, #tpu.memory_space<vmem>>, %arg4: memref<128x256xbf16, #tpu.memory_space<vmem>>, %arg5: memref<1x256xf32, #tpu.memory_space<vmem>>, %arg6: memref<256x128xbf16, #tpu.memory_space<vmem>>, %arg7: memref<1x128xf32, #tpu.memory_space<vmem>>, %arg8: memref<16x128xf32, #tpu.memory_space<vmem>>) attributes {dimension_semantics = [#tpu.dimension_semantics<parallel>], iteration_bounds = array<i64: 2>, scalar_prefetch = 0 : i64, scratch_operands = 0 : i64, tpu.core_type = #tpu.core_type<tc>, window_params = [{transform_indices = @transform_0, window_bounds = array<i64: 16, 128>}, {pipeline_mode = #tpu.pipeline_mode<synchronous>, transform_indices = @transform_1, window_bounds = array<i64: 128, 128>}, {pipeline_mode = #tpu.pipeline_mode<synchronous>, transform_indices = @transform_2, window_bounds = array<i64: 1, 128>}, {pipeline_mode = #tpu.pipeline_mode<synchronous>, transform_indices = @transform_3, window_bounds = array<i64: 128, 256>}, {pipeline_mode = #tpu.pipeline_mode<synchronous>, transform_indices = @transform_4, window_bounds = array<i64: 1, 256>}, {pipeline_mode = #tpu.pipeline_mode<synchronous>, transform_indices = @transform_5, window_bounds = array<i64: 256, 128>}, {pipeline_mode = #tpu.pipeline_mode<synchronous>, transform_indices = @transform_6, window_bounds = array<i64: 1, 128>}, {transform_indices = @transform_7, window_bounds = array<i64: 16, 128>}]} {
    %c0 = arith.constant 0 : index
    %c0_0 = arith.constant 0 : index
    %0 = vector.load %arg1[%c0, %c0_0] : memref<16x128xbf16, #tpu.memory_space<vmem>>, vector<16x128xbf16>
    %c0_1 = arith.constant 0 : index
    %c0_2 = arith.constant 0 : index
    %1 = vector.load %arg2[%c0_1, %c0_2] : memref<128x128xbf16, #tpu.memory_space<vmem>>, vector<128x128xbf16>
    %cst = arith.constant dense<0.000000e+00> : vector<16x128xf32>
    %2 = tpu.matmul %0, %1, %cst {dimension_numbers = #tpu.dot_dimension_numbers<[1], [0], [0], [1], [0, 0, 1, 1], [], []>} : vector<16x128xbf16>, vector<128x128xbf16>, vector<16x128xf32> -> vector<16x128xf32>
    %c0_3 = arith.constant 0 : index
    %c0_4 = arith.constant 0 : index
    %3 = vector.load %arg3[%c0_3, %c0_4] : memref<1x128xf32, #tpu.memory_space<vmem>>, vector<1x128xf32>
    %4 = vector.broadcast %3 : vector<1x128xf32> to vector<16x128xf32>
    %5 = arith.addf %2, %4 : vector<16x128xf32>
    %cst_5 = arith.constant 0.000000e+00 : f32
    %6 = vector.broadcast %cst_5 : f32 to vector<16x128xf32>
    %7 = arith.maximumf %5, %6 : vector<16x128xf32>
    %8 = arith.truncf %7 : vector<16x128xf32> to vector<16x128xbf16>
    %c0_6 = arith.constant 0 : index
    %c0_7 = arith.constant 0 : index
    %9 = vector.load %arg4[%c0_6, %c0_7] : memref<128x256xbf16, #tpu.memory_space<vmem>>, vector<128x256xbf16>
    %cst_8 = arith.constant dense<0.000000e+00> : vector<16x256xf32>
    %10 = tpu.matmul %8, %9, %cst_8 {dimension_numbers = #tpu.dot_dimension_numbers<[1], [0], [0], [1], [0, 0, 1, 1], [], []>} : vector<16x128xbf16>, vector<128x256xbf16>, vector<16x256xf32> -> vector<16x256xf32>
    %c0_9 = arith.constant 0 : index
    %c0_10 = arith.constant 0 : index
    %11 = vector.load %arg5[%c0_9, %c0_10] : memref<1x256xf32, #tpu.memory_space<vmem>>, vector<1x256xf32>
    %12 = vector.broadcast %11 : vector<1x256xf32> to vector<16x256xf32>
    %13 = arith.addf %10, %12 : vector<16x256xf32>
    %cst_11 = arith.constant 0.000000e+00 : f32
    %14 = vector.broadcast %cst_11 : f32 to vector<16x256xf32>
    %15 = arith.maximumf %13, %14 : vector<16x256xf32>
    %16 = arith.truncf %15 : vector<16x256xf32> to vector<16x256xbf16>
    %c0_12 = arith.constant 0 : index
    %c0_13 = arith.constant 0 : index
    %17 = vector.load %arg6[%c0_12, %c0_13] : memref<256x128xbf16, #tpu.memory_space<vmem>>, vector<256x128xbf16>
    %cst_14 = arith.constant dense<0.000000e+00> : vector<16x128xf32>
    %18 = tpu.matmul %16, %17, %cst_14 {dimension_numbers = #tpu.dot_dimension_numbers<[1], [0], [0], [1], [0, 0, 1, 1], [], []>} : vector<16x256xbf16>, vector<256x128xbf16>, vector<16x128xf32> -> vector<16x128xf32>
    %c0_15 = arith.constant 0 : index
    %c0_16 = arith.constant 0 : index
    %19 = vector.load %arg7[%c0_15, %c0_16] : memref<1x128xf32, #tpu.memory_space<vmem>>, vector<1x128xf32>
    %20 = vector.broadcast %19 : vector<1x128xf32> to vector<16x128xf32>
    %21 = arith.addf %18, %20 : vector<16x128xf32>
    %cst_17 = arith.constant 0.000000e+00 : f32
    %22 = vector.broadcast %cst_17 : f32 to vector<16x128xf32>
    %23 = arith.maximumf %21, %22 : vector<16x128xf32>
    %c0_18 = arith.constant 0 : index
    %c0_19 = arith.constant 0 : index
    %24 = vector.load %arg8[%c0_18, %c0_19] : memref<16x128xf32, #tpu.memory_space<vmem>>, vector<16x128xf32>
    tpu.vector_store %arg8[%c0_18, %c0_19], %23 {strides = array<i32>} : memref<16x128xf32, #tpu.memory_space<vmem>>, vector<16x128xf32>,
    return
  }
  func.func @transform_0(%arg0: i32) -> (i32, i32) {
    %c0_i32 = arith.constant 0 : i32
    %c0_i32_0 = arith.constant 0 : i32
    return %arg0, %c0_i32 : i32, i32
  }
  func.func @transform_1(%arg0: i32) -> (i32, i32) {
    %c0_i32 = arith.constant 0 : i32
    %c0_i32_0 = arith.constant 0 : i32
    %c0_i32_1 = arith.constant 0 : i32
    return %c0_i32, %c0_i32_0 : i32, i32
  }
  func.func @transform_2(%arg0: i32) -> (i32, i32) {
    %c0_i32 = arith.constant 0 : i32
    %c0_i32_0 = arith.constant 0 : i32
    %c0_i32_1 = arith.constant 0 : i32
    return %c0_i32, %c0_i32_0 : i32, i32
  }
  func.func @transform_3(%arg0: i32) -> (i32, i32) {
    %c0_i32 = arith.constant 0 : i32
    %c0_i32_0 = arith.constant 0 : i32
    %c0_i32_1 = arith.constant 0 : i32
    return %c0_i32, %c0_i32_0 : i32, i32
  }
  func.func @transform_4(%arg0: i32) -> (i32, i32) {
    %c0_i32 = arith.constant 0 : i32
    %c0_i32_0 = arith.constant 0 : i32
    %c0_i32_1 = arith.constant 0 : i32
    return %c0_i32, %c0_i32_0 : i32, i32
  }
  func.func @transform_5(%arg0: i32) -> (i32, i32) {
    %c0_i32 = arith.constant 0 : i32
    %c0_i32_0 = arith.constant 0 : i32
    %c0_i32_1 = arith.constant 0 : i32
    return %c0_i32, %c0_i32_0 : i32, i32
  }
  func.func @transform_6(%arg0: i32) -> (i32, i32) {
    %c0_i32 = arith.constant 0 : i32
    %c0_i32_0 = arith.constant 0 : i32
    %c0_i32_1 = arith.constant 0 : i32
    return %c0_i32, %c0_i32_0 : i32, i32
  }
  func.func @transform_7(%arg0: i32) -> (i32, i32) {
    %c0_i32 = arith.constant 0 : i32
    %c0_i32_0 = arith.constant 0 : i32
    return %arg0, %c0_i32 : i32, i32
  }
}

</mosaic_0001>

<bundles_post_ra>
// kernel: tpu_custom_call.1
= control target key start
LH: loop header
LB: loop body
LE: loop exit
PB: predicated region body
PF: predicated region fallthrough
CT: control target
= control target key end

     0   :  { %s1693_s0 = inlined_call_operand.hbm [shape: bf16[32,128], index: 0, kind: input, shape index: {}]   ;;  %s1694_s1 = inlined_call_operand.hbm [shape: bf16[128,128], index: 1, kind: input, shape index: {}]   ;;  %s1695_s2 = inlined_call_operand.vmem [shape: f32[1,128], index: 2, kind: input, shape index: {}]   ;;  %s1696_s3 = inlined_call_operand.hbm [shape: bf16[128,256], index: 3, kind: input, shape index: {}]   ;;  %s1697_s4 = inlined_call_operand.vmem [shape: f32[1,256], index: 4, kind: input, shape index: {}]   ;;  %s1698_s5 = inlined_call_operand.hbm [shape: bf16[256,128], index: 5, kind: input, shape index: {}]   ;;  %s1699_s6 = inlined_call_operand.vmem [shape: f32[1,128], index: 6, kind: input, shape index: {}]   ;;  %s1700_s7 = inlined_call_operand.hbm [shape: f32[32,128], index: 7, kind: output, shape index: {}]  }
   0x1   :  { %1709 = sst [smem:[#allocation16_spill]] %s1694_s1 }
   0x2   :  { %12 = vsyncpa [#allocation3], 0 }
   0x3   :  { %14 = vsyncpa [#allocation3 + $0x1], 0 }
   0x4   :  { %15 = vsyncpa [#allocation6], 0 }
   0x5   :  { %16 = vsyncpa [#allocation9], 0 }
   0x6   :  { %17 = vsyncpa [#allocation4], 0 }
   0x7   :  { %19 = vsyncpa [#allocation4 + $0x1], 0  ;;  %s1415_s24 = smov 0   ;;  %s1417_s25 = smov 0  }
   0x8   :  { %s1419_s26 = smov 0   ;;  %s1421_s27 = smov 0  }
   0x9 LB: > { %s1436_s28 = sadd.s32 4294967295, %s1359_s27   ;;  %s920_s29 = sadd.s32 4294967294, %s1359_s27   ;;  %s1359_s27 = sphi %s1421_s27, %s1734_s27   ;;  %s1355_s26 = sphi %s1419_s26, %s1733_s26   ;;  %s1351_s25 = sphi %s1417_s25, %s1732_s25   ;;  %s1347_s24 = sphi %s1415_s24, %s1731_s24  }
   0xa   : > { %p45_p0 = scmp.ne.s32.totalorder %s1351_s25, %s1347_s24  ;;  %p1701_p1 = scmp.eq.s32.totalorder %s1436_s28, 0 }
   0xb   : > { %p201_p3 = scmp.eq.s32.totalorder %s920_s29, 1  ;;  %p921_p5 = scmp.ge.s32.totalorder %s1359_s27, 1 }
   0xc   : > { %p1445_p4 = por %p1701_p1, %p45_p0  ;;  %p208_p7 = scmp.lt.s32.totalorder %s1359_s27, 3 }
   0xd   : > { %p1450_p6 = por %p201_p3, %p45_p0  ;;  %s1361_s10 = smov [#allocation5]  }
   0xe   : > { %s1710_s30 = scalar_select %p1445_p4, 1, 0 }
   0xf   : > { %s1711_s8 = scalar_select %p1450_p6, 1, 0 }
  0x10   : > { %p1455_p8 = pnand %p921_p5, %p208_p7  ;;  %s220_s11 = sshll.u32 %s1361_s10, 4  ;;  %s1459_s11 = int_to_ptr.vmem [resolvable:$true] %s220_s11 }
  0x11   : > { %1712 = sst [smem:[#allocation15_spill]] %s1711_s8  ;;  %s1362_s13 = smov [#allocation7]  }
  0x12   : > { %s1713_s9 = scalar_select %p1455_p8, 1, 0 }
  0x13   : > { %p1052_p9 = pneg %p1455_p8  ;;  %s236_s14 = sshll.u32 %s1362_s13, 4  ;;  %s1470_s14 = int_to_ptr.vmem [resolvable:$true] %s236_s14 }
  0x14   : > { %s1715_s1 = sld [smem:[#allocation16_spill]] }
  0x15   : > { %p1466_p11 = pnand %p1052_p9, %p1701_p1 }
  0x17   : > { %p1480_p13 = pneg %p1466_p11 }
  0x1a   : > { %s1171_s17 = scalar_lea.hbm %s1715_s1, 1024 }
  0x1b   : > { %p1172_p12 = scmp.ne.s32.totalorder %s1715_s1, %s1171_s17  ;;  %p1178_p5 = scmp.lt.u32.totalorder %s1171_s17, %s1715_s1 }
  0x1d   : > { %p1174_p0 = pnand %p1480_p13, %p1172_p12 }
  0x1f   : > { %p1175_p3 = pneg %p1174_p0 }
  0x21   : > { %p1180_p7 = pnand %p1178_p5, %p1175_p3 }
  0x23   : > { %1183 = shalt.err (!%p1180_p7)
}
  0x24   : > { %s1184_s23 = scalar_lea.vmem %s1459_s11, 1024  ;;  %p1192_p2 = scmp.lt.s32.totalorder %s1459_s11, %s1459_s11 }
  0x25   : > { %p1185_p9 = scmp.ne.s32.totalorder %s1459_s11, %s1184_s23  ;;  %p1193_p6 = scmp.lt.s32.totalorder %s1184_s23, %s1184_s23 }
  0x27   : > { %p1187_p10 = pnand %p1185_p9, %p1480_p13  ;;  %p1194_p12 = por %p1193_p6, %p1192_p2 }
  0x29   : > { %p1188_p1 = pneg %p1187_p10 }
  0x2b   : > { %p1195_p0 = pnand %p1194_p12, %p1188_p1 }
  0x2d   : > { %1198 = shalt.err (!%p1195_p0)
}
  0x2e   : > { %s1702_s29 = smov 64   ;;  %s1704_s10 = smov 4  }
  0x2f   : > { %1055 = dma.hbm_to_vmem [thread:$0]  (!%p1466_p11), %s1715_s1, 1024, %s1459_s11, [#allocation6], %s1702_s29, %s1702_s29, %s1704_s10  }
  0x30   : > { %s1199_s18 = scalar_lea.hbm %s1696_s3, 2048 }
  0x31   : > { %p1200_p1 = scmp.ne.s32.totalorder %s1696_s3, %s1199_s18  ;;  %p1206_p10 = scmp.lt.u32.totalorder %s1199_s18, %s1696_s3 }
  0x33   : > { %p1202_p2 = pnand %p1200_p1, %p1480_p13 }
  0x35   : > { %p1203_p6 = pneg %p1202_p2 }
  0x37   : > { %p1208_p3 = pnand %p1206_p10, %p1203_p6 }
  0x39   : > { %1211 = shalt.err (!%p1208_p3)
}
  0x3a   : > { %s1212_s11 = scalar_lea.vmem %s1470_s14, 2048  ;;  %p1220_p12 = scmp.lt.s32.totalorder %s1470_s14, %s1470_s14 }
  0x3b   : > { %p1213_p5 = scmp.ne.s32.totalorder %s1470_s14, %s1212_s11  ;;  %p1221_p0 = scmp.lt.s32.totalorder %s1212_s11, %s1212_s11 }
  0x3d   : > { %p1215_p7 = pnand %p1213_p5, %p1480_p13  ;;  %p1222_p1 = por %p1221_p0, %p1220_p12 }
  0x3f   : > { %p1216_p9 = pneg %p1215_p7 }
  0x41   : > { %p1223_p2 = pnand %p1222_p1, %p1216_p9 }
  0x43   : > { %1226 = shalt.err (!%p1223_p2)
}
  0x44   : > { %s1365_s13 = smov 128   ;;  %s1366_s15 = smov 8  }
  0x45   : > { %1058 = dma.hbm_to_vmem [thread:$0]  (!%p1466_p11), %s1696_s3, 2048, %s1470_s14, [#allocation6], %s1365_s13, %s1365_s13, %s1366_s15  }
  0x46   : > { %s1367_s18 = smov [#allocation8]   ;;  %s1528_s21 = sadd.s32 1, %s1359_s27  }
  0x47   : > { %s252_s19 = sshll.u32 %s1367_s18, 4  ;;  %s1227_s11 = scalar_lea.hbm %s1698_s5, 2048  ;;  %s253_s19 = int_to_ptr.vmem [resolvable:$true] %s252_s19 }
  0x48   : > { %p1228_p6 = scmp.ne.s32.totalorder %s1698_s5, %s1227_s11  ;;  %p1234_p5 = scmp.lt.u32.totalorder %s1227_s11, %s1698_s5 }
  0x4a   : > { %p1230_p10 = pnand %p1228_p6, %p1480_p13 }
  0x4c   : > { %p1231_p3 = pneg %p1230_p10 }
  0x4e   : > { %p1236_p7 = pnand %p1234_p5, %p1231_p3 }
  0x50   : > { %1239 = shalt.err (!%p1236_p7)
}
  0x51   : > { %s1240_s14 = scalar_lea.vmem %s253_s19, 2048  ;;  %p1248_p1 = scmp.lt.s32.totalorder %s253_s19, %s253_s19 }
  0x52   : > { %p1241_p9 = scmp.ne.s32.totalorder %s253_s19, %s1240_s14  ;;  %p1249_p2 = scmp.lt.s32.totalorder %s1240_s14, %s1240_s14 }
  0x54   : > { %p1243_p12 = pnand %p1241_p9, %p1480_p13  ;;  %p1250_p4 = por %p1249_p2, %p1248_p1 }
  0x56   : > { %p1244_p0 = pneg %p1243_p12 }
  0x58   : > { %p1251_p8 = pnand %p1250_p4, %p1244_p0 }
  0x5a   : > { %1254 = shalt.err (!%p1251_p8)
}
  0x5b   : > { %s1717_s29 = smov 4   ;;  %s1718_s10 = smov 64  }
  0x5c   : > { %1061 = dma.hbm_to_vmem [thread:$0]  (!%p1466_p11), %s1698_s5, 2048, %s253_s19, [#allocation9], %s1718_s10, %s1718_s10, %s1717_s29  }
  0x5d   : > { %s29_s20 = ssub.s32 %s1359_s27, %s1528_s21  ;;  %s32_s12 = sadd.s32 1, %s1355_s26 }
  0x5e   : > { %p30_p4 = scmp.eq.s32.totalorder %s29_s20, 0  ;;  %p39_p8 = scmp.ne.s32.totalorder %s1355_s26, %s1351_s25 }
  0x5f   : > { %p40_p13 = scmp.eq.s32.totalorder %s1359_s27, 0  ;;  %p1073_p6 = scmp.lt.s32.totalorder %s1359_s27, 2 }
  0x60   : > { %s1559_s13 = scalar_select %p30_p4, %s1355_s26, %s32_s12  }
  0x61   : > { %p41_p10 = por %p40_p13, %p39_p8  ;;  %p1719_p3 = scmp.eq.s32.totalorder %s1436_s28, 1 }
  0x62   : > { %s269_s16 = sand.u32 1, %s1355_s26   ;;  %s983_s17 = sshll.u32 %s1359_s27, 7 }
  0x63   : > { %p1563_p5 = por %p1719_p3, %p39_p8  ;;  %s926_s18 = sshll.u32 %s269_s16, 3 }
  0x64   : > { %s1572_s19 = scalar_lea.hbm %s1693_s0, %s983_s17  ;;  %s273_s11 = scalar_lea.vmem [#allocation2], %s926_s18 }
  0x65   : > { %s280_s14 = sshll.u32 %s273_s11, 4  ;;  %p1574_p11 = pnand %p1073_p6, %p41_p10  ;;  %s1578_s14 = int_to_ptr.vmem [resolvable:$true] %s280_s14 }
  0x66   : > { %s1580_s8 = scalar_lea.sflag [#allocation3], %s269_s16  ;;  %s1255_s20 = scalar_lea.hbm %s1572_s19, 128 }
  0x67   : > { %p1256_p7 = scmp.ne.s32.totalorder %s1572_s19, %s1255_s20  ;;  %p1257_p9 = pneg %p1574_p11 }
  0x68   : > { %s1260_s18 = scalar_lea.hbm %s1693_s0, 256  ;;  %p1261_p1 = scmp.lt.u32.totalorder %s1572_s19, %s1693_s0 }
  0x69   : > { %p1258_p12 = pnand %p1257_p9, %p1256_p7  ;;  %p1262_p2 = scmp.lt.u32.totalorder %s1260_s18, %s1255_s20 }
  0x6a   : > { %p1264_p8 = scmp.lt.u32.totalorder %s1255_s20, %s1572_s19 }
  0x6b   : > { %p1259_p0 = pneg %p1258_p12  ;;  %p1263_p4 = por %p1262_p2, %p1261_p1 }
  0x6d   : > { %p1265_p13 = por %p1264_p8, %p1263_p4 }
  0x6f   : > { %p1266_p6 = pnand %p1265_p13, %p1259_p0 }
  0x71   : > { %1269 = shalt.err (!%p1266_p6)
}
  0x72   : > { %s1270_s16 = scalar_lea.vmem %s1578_s14, 128  ;;  %s1368_s11 = smov [#allocation2]  }
  0x73   : > { %p1271_p10 = scmp.ne.s32.totalorder %s1578_s14, %s1270_s16  ;;  %s1275_s12 = sshll.u32 %s1368_s11, 4  ;;  %s1276_s12 = int_to_ptr.vmem [resolvable:$false] %s1275_s12 }
  0x74   : > { %s1277_s17 = scalar_lea.vmem %s1276_s12, 256  ;;  %p1278_p12 = scmp.lt.s32.totalorder %s1578_s14, %s1276_s12 }
  0x75   : > { %p1273_p3 = pnand %p1271_p10, %p1257_p9  ;;  %p1279_p1 = scmp.lt.s32.totalorder %s1277_s17, %s1270_s16 }
  0x77   : > { %p1274_p7 = pneg %p1273_p3  ;;  %p1280_p2 = por %p1279_p1, %p1278_p12 }
  0x79   : > { %p1281_p4 = pnand %p1280_p2, %p1274_p7 }
  0x7b   : > { %1284 = shalt.err (!%p1281_p4)
}
  0x7c   : > { %1065 = dma.hbm_to_vmem [thread:$0]  (!%p1574_p11), %s1572_s19, 128, %s1578_s14, %s1580_s8, %s1718_s10, %s1718_s10, %s1717_s29  }
  0x7d   : > { %p1722_p9 = scmp.ne.s32.totalorder %s1713_s9, 0 }
  0x7e   : > { %s1614_s20 = sand.u32 (!%p1722_p9), 1, %s1351_s25   ;;  %p1723_p0 = scmp.ne.s32.totalorder (!%p1722_p9), %s1710_s30, 0 }
  0x7f   : > { %292 = sbr.rel (%p1722_p9) target bundleno = 853 (0x355), region = 48  ;;  %s930_s18 = sshll.u32 (!%p1722_p9), %s1614_s20, 3 }
  0x80   : > { %s295_s22 = scalar_lea.sflag (!%p1722_p9), [#allocation3], %s1614_s20  ;;  %s1618_s23 = scalar_lea.vmem (!%p1722_p9), [#allocation2], %s930_s18 }
  0x86   : > { %1330 = dma.done.wait (%p1723_p0), %s295_s22, 128  }
  0x87   : > { %1332 = vsyncadd (%p1723_p0), %s295_s22, 4294967168  ;;  %p1724_p11 = scmp.eq.s32.totalorder %s1436_s28, 0 }
  0x89   : > { %1334 = dma.done.wait (%p1724_p11), [#allocation6], 3072   ;;  %p1725_p8 = pmov %p1724_p11 }
  0x8b   : > { %1336 = vsyncadd (%p1725_p8), [#allocation6], 4294964224  ;;  %p1726_p13 = pmov %p1725_p8 }
  0x8c   : > { %p1727_p6 = pmov %p1725_p8 }
  0x8d   : > { %1338 = dma.done.wait (%p1726_p13), [#allocation9], 2048  }
  0x8e   : > { %1340 = vsyncadd (%p1727_p6), [#allocation9], 4294965248  ;;  %v1369_v0 = vmov 0.0   ;;  %vm1370_vm0 = vmmov 0   ;;  %v1122_v1 = vld [vmem:[#allocation5] sm:$0xff]   ;;  %v1123_v2 = vld [vmem:[#allocation5 + $0x8] sm:$0xff]   ;;  %v485_v53 = vlaneseq }
  0x8f   : > { %1016 = vmatprep.subr.bf16.mxu0 %v1369_v0  ;;  %1032 = vmatprep.mubr.msk.bf16.mxu0 %vm1370_vm0, %v1369_v0  ;;  %v1124_v3 = vld [vmem:[#allocation5 + $0x10] sm:$0xff]   ;;  %v1125_v4 = vld [vmem:[#allocation5 + $0x18] sm:$0xff]   ;;  %v1131_v5 = vld [vmem:[#allocation7 + $0x4] ss:$8 sps:$4 sm:$0xff]   ;;  %v1371_v26 = vmov 0   ;;  %s934_s19 = sshll.u32 %s1614_s20, 4 }
  0x90   : > { %1017 = vmatpush3.bf16.msra.mxu0 %v1122_v1  ;;  %v1133_v6 = vld [vmem:[#allocation7] ss:$8 sps:$4 sm:$0xff]   ;;  %575 = vmatprep.subr.bf16.mxu1 %v1131_v5  ;;  %v1134_v7 = vld [vmem:[#allocation7 + $0x14] ss:$8 sps:$4 sm:$0xff]   ;;  %v1136_v8 = vld [vmem:[#allocation7 + $0x10] ss:$8 sps:$4 sm:$0xff]  }
  0x91   : > { %1018 = vmatprep.subr.bf16.mxu0 %v1369_v0  ;;  %576 = vmatpush1.bf16.msra.mxu1 %v1133_v6  ;;  %v1137_v9 = vld [vmem:[#allocation7 + $0x24] ss:$8 sps:$4 sm:$0xff]   ;;  %v1139_v12 = vld [vmem:[#allocation7 + $0x20] ss:$8 sps:$4 sm:$0xff]   ;;  %v1140_v13 = vld [vmem:[#allocation7 + $0x34] ss:$8 sps:$4 sm:$0xff]  }
  0x92   : > { %577 = vmatprep.subr.bf16.mxu1 %v1134_v7  ;;  %v1126_v10 = vld [vmem:[#allocation5 + $0x20] sm:$0xff]   ;;  %v1127_v11 = vld [vmem:[#allocation5 + $0x28] sm:$0xff]   ;;  %v1142_v14 = vld [vmem:[#allocation7 + $0x30] ss:$8 sps:$4 sm:$0xff]   ;;  %607 = vmatprep.mubr.bf16.mxu1 %v1371_v26  ;;  %v486_v54 = vshrl.u32 %v485_v53, 7  ;;  %s340_s8 = scalar_lea.vmem [#allocation10], %s934_s19 }
  0x93   : > { %v1143_v15 = vld [vmem:[#allocation7 + $0x44] ss:$8 sps:$4 sm:$0xff]   ;;  %v1128_v16 = vld [vmem:[#allocation5 + $0x30] sm:$0xff]   ;;  %v1145_v17 = vld [vmem:[#allocation7 + $0x40] ss:$8 sps:$4 sm:$0xff]   ;;  %s818_s16 = sshll.u32 %s340_s8, 4  ;;  %s1644_s16 = int_to_ptr.vmem [resolvable:$true] %s818_s16 }
  0x94   : > { %1019 = vmatpush3.bf16.msra.mxu0 %v1123_v2  ;;  %v1146_v18 = vld [vmem:[#allocation7 + $0x54] ss:$8 sps:$4 sm:$0xff]   ;;  %v1148_v20 = vld [vmem:[#allocation7 + $0x50] ss:$8 sps:$4 sm:$0xff]   ;;  %v1149_v22 = vld [vmem:[#allocation7 + $0x64] ss:$8 sps:$4 sm:$0xff]  }
  0x95   : > { %1020 = vmatprep.subr.bf16.mxu0 %v1369_v0  ;;  %578 = vmatpush1.bf16.msra.mxu1 %v1136_v8  ;;  %v1129_v19 = vld [vmem:[#allocation5 + $0x38] sm:$0xff]   ;;  %v1151_v23 = vld [vmem:[#allocation7 + $0x60] ss:$8 sps:$4 sm:$0xff]   ;;  %v1159_v31 = vld [vmem:[#allocation8 + $0x50] sm:$0xff]   ;;  %v487_v55 = vsub.s32 0, %v486_v54  ;;  %v491_v57 = vsub.s32 1, %v486_v54 }
  0x96   : > { %579 = vmatprep.subr.bf16.mxu1 %v1137_v9  ;;  %v1130_v21 = vld [vmem:[%s1618_s23] sm:$0xff]   ;;  %v1155_v27 = vld [vmem:[#allocation8 + $0x40] sm:$0xff]   ;;  %v1157_v29 = vld [vmem:[#allocation8 + $0x48] sm:$0xff]   ;;  %s984_s11 = sshll.u32 %s1436_s28, 8  ;;  %s805_s22 = scalar_lea.sflag [#allocation4], %s1614_s20 }
  0x97   : > { %v1152_v24 = vld [vmem:[#allocation7 + $0x74] ss:$8 sps:$4 sm:$0xff]   ;;  %v1154_v25 = vld [vmem:[#allocation7 + $0x70] ss:$8 sps:$4 sm:$0xff]   ;;  %v1156_v28 = vld [vmem:[#allocation8] sm:$0xff]   ;;  %s1649_s18 = scalar_lea.hbm %s1700_s7, %s984_s11  ;;  %s1285_s23 = scalar_lea.vmem %s1644_s16, 256 }
  0x98   : > { %1021 = vmatpush3.bf16.msra.mxu0 %v1124_v3  ;;  %v1158_v30 = vld [vmem:[#allocation8 + $0x8] sm:$0xff]   ;;  %v1160_v32 = vld [vmem:[#allocation8 + $0x10] sm:$0xff]   ;;  %v1161_v33 = vld [vmem:[#allocation8 + $0x58] sm:$0xff]   ;;  %p1286_p10 = scmp.ne.s32.totalorder %s1644_s16, %s1285_s23  ;;  %s1372_s28 = smov [#allocation10]  }
  0x99   : > { %1022 = vmatprep.subr.bf16.mxu0 %v1369_v0  ;;  %580 = vmatpush1.bf16.msra.mxu1 %v1139_v12  ;;  %v1162_v34 = vld [vmem:[#allocation8 + $0x18] sm:$0xff]   ;;  %v1163_v35 = vld [vmem:[#allocation8 + $0x60] sm:$0xff]   ;;  %v1165_v37 = vld [vmem:[#allocation8 + $0x68] sm:$0xff]   ;;  %s1289_s30 = sshll.u32 %s1372_s28, 4  ;;  %s1290_s30 = int_to_ptr.vmem [resolvable:$false] %s1289_s30 }
  0x9a   : > { %581 = vmatprep.subr.bf16.mxu1 %v1140_v13  ;;  %v1164_v36 = vld [vmem:[#allocation8 + $0x20] sm:$0xff]   ;;  %v935_v38 = vld [vmem:[%s1695_s2] ss:$0 sm:$0xff]  ;;  %v1166_v48 = vld [vmem:[#allocation8 + $0x28] sm:$0xff]   ;;  %p1287_p3 = pnand %p1286_p10, %p1563_p5  ;;  %s1291_s9 = scalar_lea.vmem %s1290_s30, 512 }
  0x9b   : > { %v1167_v49 = vld [vmem:[#allocation8 + $0x70] sm:$0xff]   ;;  %v1169_v51 = vld [vmem:[#allocation8 + $0x78] sm:$0xff]   ;;  %p1292_p12 = scmp.lt.s32.totalorder %s1644_s16, %s1290_s30  ;;  %p1293_p1 = scmp.lt.s32.totalorder %s1291_s9, %s1285_s23 }
  0x9c   : > { %1023 = vmatpush3.bf16.msra.mxu0 %v1125_v4  ;;  %v1168_v50 = vld [vmem:[#allocation8 + $0x30] sm:$0xff]   ;;  %v1170_v52 = vld [vmem:[#allocation8 + $0x38] sm:$0xff]   ;;  %p1288_p7 = pneg %p1287_p3 }
  0x9d   : > { %1024 = vmatprep.subr.bf16.mxu0 %v1369_v0  ;;  %582 = vmatpush1.bf16.msra.mxu1 %v1142_v14  ;;  %v483_v56 = vld [vmem:[%s1697_s4] sm:$0x3]  ;;  %p1294_p2 = por %p1293_p1, %p1292_p12 }
  0x9e   : > { %583 = vmatprep.subr.bf16.mxu1 %v1143_v15  ;;  %v488_v58 = vrot.slane %v483_v56, %v487_v55  ;;  %v492_v59 = vrot.slane %v483_v56, %v491_v57 }
  0x9f   : > { %p1295_p4 = pnand %p1294_p2, %p1288_p7 }
  0xa0   : > { %1025 = vmatpush3.bf16.msra.mxu0 %v1126_v10 }
  0xa1   : > { %1026 = vmatprep.subr.bf16.mxu0 %v1369_v0  ;;  %584 = vmatpush1.bf16.msra.mxu1 %v1145_v17 }
  0xa2   : > { %585 = vmatprep.subr.bf16.mxu1 %v1146_v18 }
  0xa4   : > { %1027 = vmatpush3.bf16.msra.mxu0 %v1127_v11  ;;  %v961_v11 = vld [vmem:[%s1699_s6] ss:$0 sm:$0xff] }
  0xa5   : > { %1028 = vmatprep.subr.bf16.mxu0 %v1369_v0  ;;  %586 = vmatpush1.bf16.msra.mxu1 %v1148_v20 }
  0xa6   : > { %587 = vmatprep.subr.bf16.mxu1 %v1149_v22 }
  0xa8   : > { %1029 = vmatpush3.bf16.msra.mxu0 %v1128_v16 }
  0xa9   : > { %1030 = vmatprep.subr.bf16.mxu0 %v1369_v0  ;;  %588 = vmatpush1.bf16.msra.mxu1 %v1151_v23 }
  0xaa   : > { %589 = vmatprep.subr.bf16.mxu1 %v1152_v24 }
  0xac   : > { %1031 = vmatpush3.bf16.msra.mxu0 %v1129_v19 }
  0xad   : > { %590 = vmatpush1.bf16.msra.mxu1 %v1154_v25  ;;  %994 = vmatprep.subr.bf16.mxu0 %v1155_v27 }
  0xaf   : > { %1033 = vmatmul.mubr.bf16.vlgmr.msra.gmra.mrb[0].mxu0 %v1130_v21 }
  0xb0   : > { %995 = vmatpush3.bf16.msra.mxu0 %v1156_v28 }
  0xb1   : > { %996 = vmatprep.subr.bf16.mxu0 %v1157_v29 }
  0xb4   : > { %997 = vmatpush3.bf16.msra.mxu0 %v1158_v30 }
  0xb5   : > { %998 = vmatprep.subr.bf16.mxu0 %v1159_v31 }
  0xb8   : > { %999 = vmatpush3.bf16.msra.mxu0 %v1160_v32 }
  0xb9   : > { %1000 = vmatprep.subr.bf16.mxu0 %v1161_v33 }
  0xbc   : > { %1001 = vmatpush3.bf16.msra.mxu0 %v1162_v34 }
  0xbd   : > { %1002 = vmatprep.subr.bf16.mxu0 %v1163_v35 }
  0xc0   : > { %1003 = vmatpush3.bf16.msra.mxu0 %v1164_v36 }
  0xc1   : > { %1004 = vmatprep.subr.bf16.mxu0 %v1165_v37 }
  0xc4   : > { %1005 = vmatpush3.bf16.msra.mxu0 %v1166_v48 }
  0xc5   : > { %1006 = vmatprep.subr.bf16.mxu0 %v1167_v49 }
  0xc8   : > { %1007 = vmatpush3.bf16.msra.mxu0 %v1168_v50 }
  0xc9   : > { %1008 = vmatprep.subr.bf16.mxu0 %v1169_v51 }
  0xcc   : > { %1009 = vmatpush3.bf16.msra.mxu0 %v1170_v52 }
 0x182   : > { %v457_v39 = vpop.f32.mrb[0].mxu0 }
 0x183   : > { %v458_v40 = vadd.f32 %v935_v38, %v457_v39  ;;  %v1034_v41 = vpop.f32.mrb[1].mxu0 }
 0x184   : > { %v460_v42 = vpop.f32.mrb[2].mxu0 }
 0x185   : > { %v461_v43 = vadd.f32 %v935_v38, %v460_v42  ;;  %v1035_v44 = vpop.f32.mrb[3].mxu0  ;;  %v464_v45 = vmax.f32 %v458_v40, 0.0 }
 0x187   : > { %v465_v46 = vmax.f32 %v461_v43, 0.0 }
 0x189   : > { %v466_v47 = vpack.c.bf16 %v465_v46, %v464_v45 }
 0x18b   : > { %608 = vmatmul.mubr.bf16.vlgmr.msra.gmra.mrb[0].mxu1 %v466_v47 }
 0x25e   : > { %v609_v60 = vpop.f32.mrb[0].mxu1 }
 0x25f   : > { %v610_v61 = vadd.f32 %v609_v60, %v488_v58  ;;  %v611_v62 = vpop.f32.mrb[1].mxu1 }
 0x260   : > { %v612_v63 = vadd.f32 %v611_v62, %v492_v59  ;;  %v613_v0 = vpop.f32.mrb[2].mxu1 }
 0x261   : > { %v614_v1 = vadd.f32 %v613_v0, %v488_v58  ;;  %v615_v2 = vpop.f32.mrb[3].mxu1  ;;  %v618_v4 = vmax.f32 %v610_v61, 0.0 }
 0x262   : > { %v616_v3 = vadd.f32 %v615_v2, %v492_v59  ;;  %v619_v6 = vmax.f32 %v612_v63, 0.0 }
 0x263   : > { %v620_v5 = vmax.f32 %v614_v1, 0.0 }
 0x264   : > { %v621_v7 = vmax.f32 %v616_v3, 0.0 }
 0x265   : > { %v622_v8 = vpack.c.bf16 %v620_v5, %v618_v4 }
 0x266   : > { %v623_v9 = vpack.c.bf16 %v621_v7, %v619_v6 }
 0x268   : > { %791 = vmatprep.mubr.bf16.mxu0 %v623_v9 }
 0x269   : > { %792 = vmatmul.mubr.bf16.vlgmr.msra.gmra.mrb[4].mxu0 %v622_v8 }
 0x33c   : > { %v1010_v10 = vpop.f32.mrb[4].mxu0 }
 0x33d   : > { %v1011_v12 = vpop.f32.mrb[5].mxu0 }
 0x33e   : > { %v1012_v13 = vadd.f32 %v1011_v12, %v1010_v10  ;;  %v1013_v14 = vpop.f32.mrb[6].mxu0 }
 0x33f   : > { %v1014_v15 = vpop.f32.mrb[7].mxu0 }
 0x340   : > { %v794_v16 = vadd.f32 %v1012_v13, %v961_v11  ;;  %v1015_v17 = vadd.f32 %v1014_v15, %v1013_v14 }
 0x342   : > { %v800_v18 = vmax.f32 %v794_v16, 0.0  ;;  %v797_v19 = vadd.f32 %v1015_v17, %v961_v11 }
 0x344   : > { %802 = vst [vmem:[%s340_s8] sm:$0xff] %v800_v18  ;;  %v801_v20 = vmax.f32 %v797_v19, 0.0 }
 0x346   : > { %803 = vst [vmem:[%s340_s8 + $0x8] sm:$0xff] %v801_v20 }
 0x347   : > { %1298 = shalt.err (!%p1295_p4)
}
 0x348   : > { %s1299_s29 = scalar_lea.hbm %s1649_s18, 256  ;;  %s1303_s14 = scalar_lea.hbm %s1700_s7, 512 }
 0x349   : > { %p1300_p9 = scmp.ne.s32.totalorder %s1649_s18, %s1299_s29  ;;  %p1304_p8 = scmp.lt.u32.totalorder %s1649_s18, %s1700_s7 }
 0x34a   : > { %p1305_p13 = scmp.lt.u32.totalorder %s1303_s14, %s1299_s29  ;;  %p1307_p10 = scmp.lt.u32.totalorder %s1299_s29, %s1649_s18 }
 0x34b   : > { %p1301_p0 = pnand %p1300_p9, %p1563_p5 }
 0x34c   : > { %p1306_p6 = por %p1305_p13, %p1304_p8 }
 0x34d   : > { %p1302_p11 = pneg %p1301_p0 }
 0x34e   : > { %p1308_p3 = por %p1307_p10, %p1306_p6 }
 0x350   : > { %p1309_p7 = pnand %p1308_p3, %p1302_p11 }
 0x352   : > { %1312 = shalt.err (!%p1309_p7)
}
 0x353   : > { %s1373_s11 = smov 128   ;;  %s1374_s12 = smov 8  }
 0x354   : > { %1050 = dma.vmem_to_hbm [thread:$0]  (%p1563_p5), %s1644_s16, 256, %s1649_s18, %s805_s22, %s1373_s11, %s1373_s11, %s1374_s12  }
 0x355 PF: > { %s1728_s17 = sld [smem:[#allocation15_spill]]  ;;  %s833_s23 = sand.u32 1, %s1347_s24  }
 0x356   : > { %p1730_p1 = scmp.ge.s32.totalorder %s1359_s27, 2  ;;  %s834_s28 = scalar_lea.sflag [#allocation4], %s833_s23 }
 0x35b   : > { %p1729_p12 = scmp.ne.s32.totalorder %s1728_s17, 0 }
 0x35d   : > { %p1067_p2 = pnand %p1730_p1, %p1729_p12 }
 0x35f   : > { %1342 = dma.done.wait (!%p1067_p2), %s834_s28, 256  }
 0x360   : > { %1344 = vsyncadd (!%p1067_p2), %s834_s28, 4294967040  ;;  %p22_p4 = scmp.ge.s32.totalorder %s1528_s21, 4   ;;  %s1731_s24 = smov %s1351_s25 }
 0x361   : > { %s1732_s25 = smov %s1355_s26  ;;  %s1733_s26 = smov %s1559_s13 }
 0x362   : > { %s1734_s27 = smov %s1528_s21  ;;  %24 = sbr.rel (!%p22_p4) target bundleno = 9 (0x9), region = 105 }
 0x369   :  { %839 = vsyncpa [#allocation3], 1 }
 0x36a   :  { %841 = vsyncpa [#allocation3 + $0x1], 1 }
 0x36b   :  { %842 = vsyncpa [#allocation6], 1 }
 0x36c   :  { %843 = vsyncpa [#allocation9], 1 }
 0x36d   :  { %844 = vsyncpa [#allocation4], 1 }
 0x36e   :  { %846 = vsyncpa [#allocation4 + $0x1], 1 }

</bundles_post_ra>
